<compile_context>
chip_gen: v7x
topology: tpu7x:2x2x1
jax: 0.10.0
libtpu: 0.0.40
codegen_flags: <defaults>
</compile_context>

<pallas_src>
import jax
import jax.numpy as jnp
from jax import lax
from jax.experimental import pallas as pl
from jax.experimental.pallas import tpu as pltpu


NEG_SLOPE = 0.01  # nn.LeakyReLU default negative_slope
LANES = 128


# --------------------------------------------------------------------------- #
# Kernel
# --------------------------------------------------------------------------- #
def _make_kernel(nk_tile):
    """Kernel factory. nk_tile == N traces the single-pass softmax path;
    otherwise a flash-style online softmax over key tiles is traced."""

    def kernel(x_ref, w_ref, b_ref, out_ref):
        bgt, n, gdp = x_ref.shape
        # One fused MXU pass against the block-diagonal [GDp, 3*GDp] weight.
        x2d = x_ref[...].astype(jnp.float32).reshape(bgt * n, gdp)
        qkv = jnp.dot(x2d, w_ref[...], preferred_element_type=jnp.float32) + b_ref[...]
        qkv = qkv.reshape(bgt, n, 3 * gdp)
        q = qkv[:, :, :gdp]                  # [Bgt, N, GDp] (128-lane aligned views)
        k = qkv[:, :, gdp:2 * gdp]
        v = qkv[:, :, 2 * gdp:]

        n_kt = n // nk_tile
        if n_kt == 1:
            # Single-pass softmax over the key axis; normalization fused into
            # the epilogue (no materialized `alphas`).
            s = q[:, :, None, :] * k[:, None, :, :]          # [Bgt, Nq, Nk, GDp]
            e = jnp.exp(s - jnp.max(s, axis=2, keepdims=True))
            denom = jnp.sum(e, axis=2)                        # [Bgt, Nq, GDp]
            num = jnp.sum(e * v[:, None, :, :], axis=2)       # [Bgt, Nq, GDp]
            att = num * pl.reciprocal(denom, approx=False)
        else:
            # Flash-style online softmax over key tiles: bounds live VMEM to
            # O(Nq * nk_tile * GDp) -- needed for large N on v7x's smaller VMEM.
            def body(t, carry):
                m, l, acc = carry
                k_t = lax.dynamic_slice_in_dim(k, t * nk_tile, nk_tile, axis=1)
                v_t = lax.dynamic_slice_in_dim(v, t * nk_tile, nk_tile, axis=1)
                s = q[:, :, None, :] * k_t[:, None, :, :]     # [Bgt, Nq, nk_tile, GDp]
                m_new = jnp.maximum(m, jnp.max(s, axis=2))
                e = jnp.exp(s - m_new[:, :, None, :])
                scale = jnp.exp(m - m_new)
                l = scale * l + jnp.sum(e, axis=2)
                acc = scale * acc + jnp.sum(e * v_t[:, None, :, :], axis=2)
                return m_new, l, acc

            shp = q.shape
            m0 = jnp.full(shp, -jnp.inf, jnp.float32)
            l0 = jnp.zeros(shp, jnp.float32)
            a0 = jnp.zeros(shp, jnp.float32)
            _, l, acc = lax.fori_loop(0, n_kt, body, (m0, l0, a0))
            att = acc * pl.reciprocal(l, approx=False)

        # LeakyReLU (elementwise, so applying before the token-0 drop is equal).
        y = jnp.where(att >= 0, att, NEG_SLOPE * att)
        out_ref[...] = y.astype(out_ref.dtype)

    return kernel


# --------------------------------------------------------------------------- #
# Wrapper helpers
# --------------------------------------------------------------------------- #
def _pad_to(n, m):
    return ((n + m - 1) // m) * m


def _lane_pack_factor(D):
    """Number of batch elements folded into the 128-lane axis."""
    return max(1, LANES // D)


def _build_fused_qkv(wq, bq, wk, bk, wv, bv, G, GDp):
    """Block-diagonal fused [GDp, 3*GDp] weight and [1, 3*GDp] bias, zero-padded
    so all lane splits sit on 128-lane boundaries."""
    D = wq.shape[0]
    GD = G * D
    eye_g = jnp.eye(G, dtype=wq.dtype)

    def blockdiag(w):
        wbd = jnp.kron(eye_g, w)                                  # [GD, GD]
        return jnp.pad(wbd, ((0, GDp - GD), (0, GDp - GD)))

    def tile_bias(b):
        return jnp.pad(jnp.tile(b, G), (0, GDp - GD))

    w_all = jnp.concatenate([blockdiag(wq), blockdiag(wk), blockdiag(wv)], axis=1)
    b_all = jnp.concatenate([tile_bias(bq), tile_bias(bk), tile_bias(bv)])
    return w_all, b_all.reshape(1, 3 * GDp)


def _pick_group_block(Bg, N, GDp):
    """Packed groups per grid step: amortize per-step overhead / raise MXU rows,
    while keeping >=2 parallel grid steps for v7x megacore when possible."""
    row_target = 256              # MXU rows target for the fused projection
    max_block_bytes = 2 << 20     # keep the packed-x block <= ~2 MiB
    best = 1
    for cand in range(1, Bg + 1):
        if Bg % cand:
            continue
        if cand * N > 2 * row_target:
            continue
        if cand * N * GDp * 4 > max_block_bytes:
            continue
        if Bg >= 2 and Bg // cand < 2:
            continue              # keep >=2 parallel steps (both TCs busy on v7x)
        best = cand
    return best


def _pick_key_tile(Bgt, N, GDp):
    """N -> single-pass softmax; otherwise key-tile size for online softmax."""
    if 3 * Bgt * N * N * GDp * 4 <= (16 << 20):
        return N
    for t in range(min(N, 256), 0, -1):
        if N % t == 0:
            return t
    return N


def _vmem_limit_bytes():
    try:
        cap = int(pltpu.get_tpu_info().vmem_capacity_bytes)
    except Exception:
        kind = jax.devices()[0].device_kind.lower()
        cap = (64 << 20) if "7" in kind else (128 << 20)
    # Leave headroom for Mosaic internal scratch; ~100 MiB v5e/v6e, ~56 MiB v7x.
    return int(min(100 << 20, cap - (8 << 20)))


# --------------------------------------------------------------------------- #
# Public forward (factory hoists the fused-weight build out of the per-call path)
# --------------------------------------------------------------------------- #
def make_att0_1_multiply(wq, bq, wk, bk, wv, bv):
    """Returns a jitted forward(embeddings) -> [B, N-1, D] closure."""
    D = wq.shape[0]
    G = _lane_pack_factor(D)
    GD = G * D
    GDp = _pad_to(GD, LANES)
    w_all, b_all = _build_fused_qkv(wq, bq, wk, bk, wv, bv, G, GDp)
    w_all = jax.device_put(w_all)
    b_all = jax.device_put(b_all)
    vmem_limit = _vmem_limit_bytes()

    @jax.jit
    def forward(embeddings):
        B, N, D_in = embeddings.shape
        assert D_in == D, (D_in, D)
        # Pad batch to a multiple of the packing group (padded rows are dropped).
        Bp = _pad_to(B, G)
        x = embeddings
        if Bp != B:
            x = jnp.pad(x, ((0, Bp - B), (0, 0), (0, 0)))
        Bg = Bp // G

        # Lane-pack: x_p[bg, n, g*D + d] = x[bg*G + g, n, d]; pad lanes to GDp.
        x_p = (x.reshape(Bg, G, N, D)
                .transpose(0, 2, 1, 3)
                .reshape(Bg, N, GD))
        if GDp != GD:
            x_p = jnp.pad(x_p, ((0, 0), (0, 0), (0, GDp - GD)))

        Bgt = _pick_group_block(Bg, N, GDp)
        nk_tile = _pick_key_tile(Bgt, N, GDp)

        out_p = pl.pallas_call(
            _make_kernel(nk_tile),
            out_shape=jax.ShapeDtypeStruct((Bg, N, GDp), embeddings.dtype),
            grid_spec=pltpu.PrefetchScalarGridSpec(
                num_scalar_prefetch=0,
                grid=(Bg // Bgt,),
                in_specs=[
                    pl.BlockSpec((Bgt, N, GDp), lambda g: (g, 0, 0)),    # packed x
                    pl.BlockSpec((GDp, 3 * GDp), lambda g: (0, 0)),      # fused Wqkv
                    pl.BlockSpec((1, 3 * GDp), lambda g: (0, 0)),        # fused bias
                ],
                out_specs=pl.BlockSpec((Bgt, N, GDp), lambda g: (g, 0, 0)),
            ),
            compiler_params=pltpu.CompilerParams(
                dimension_semantics=("parallel",),
                vmem_limit_bytes=vmem_limit),
        )(x_p, w_all, b_all)

        # Un-pack lanes back to [B, N, D]; pad-lane / pad-batch / token-0 drops
        # are free slices fused with the transpose under jit.
        out_full = (out_p[:, :, :GD]
                    .reshape(Bg, N, G, D)
                    .transpose(0, 2, 1, 3)
                    .reshape(Bp, N, D))
        return out_full[:B, 1:, :]

    return forward


# --------------------------------------------------------------------------- #
# Pure-JAX reference
# --------------------------------------------------------------------------- #
def _reference(embeddings, wq, bq, wk, bk, wv, bv):
    q = embeddings @ wq + bq
    k = embeddings @ wk + bk
    v = embeddings @ wv + bv
    s = q[:, :, None, :] * k[:, None, :, :]              # [B, Nq, Nk, D]
    alphas = jax.nn.softmax(s, axis=-2)
    att = jnp.sum(alphas * v[:, None, :, :], axis=-2)    # [B, Nq, D]
    y = att[:, 1:, :]
    return jnp.where(y >= 0, y, NEG_SLOPE * y)


if __name__ == "__main__":
    # batch, tokens, em_dim. G=4 -> GD=128 lane-dense, Bg=4 packed groups,
    # Bgt=2 per step -> grid=(2,) parallel steps (megacore-friendly).
    B, N, D = 16, 8, 32

    key = jax.random.PRNGKey(0)
    k_emb, k_wq, k_bq, k_wk, k_bk, k_wv, k_bv = jax.random.split(key, 7)

    embeddings = jax.random.normal(k_emb, (B, N, D), dtype=jnp.float32)
    scale = 1.0 / jnp.sqrt(jnp.float32(D))
    wq = jax.random.normal(k_wq, (D, D), dtype=jnp.float32) * scale
    bq = jax.random.normal(k_bq, (D,), dtype=jnp.float32) * 0.1
    wk = jax.random.normal(k_wk, (D, D), dtype=jnp.float32) * scale
    bk = jax.random.normal(k_bk, (D,), dtype=jnp.float32) * 0.1
    wv = jax.random.normal(k_wv, (D, D), dtype=jnp.float32) * scale
    bv = jax.random.normal(k_bv, (D,), dtype=jnp.float32) * 0.1

    forward = make_att0_1_multiply(wq, bq, wk, bk, wv, bv)
    out = jax.block_until_ready(forward(embeddings))

    ref = _reference(embeddings, wq, bq, wk, bk, wv, bv)
    assert out.shape == (B, N - 1, D), out.shape
    max_err = float(jnp.max(jnp.abs(out - ref)))
    assert jnp.allclose(out, ref, atol=1e-4, rtol=1e-4), max_err

    print("KERNEL_OK")
</pallas_src>

<mosaic_0001>
module attributes {stable_mosaic.version = 11 : i64} {
  func.func @kernel(%arg0: i32, %arg1: memref<2x8x128xf32, #tpu.memory_space<vmem>>, %arg2: memref<128x384xf32, #tpu.memory_space<vmem>>, %arg3: memref<1x384xf32, #tpu.memory_space<vmem>>, %arg4: memref<2x8x128xf32, #tpu.memory_space<vmem>>) attributes {dimension_semantics = [#tpu.dimension_semantics<parallel>], iteration_bounds = array<i64: 2>, scalar_prefetch = 0 : i64, scratch_operands = 0 : i64, tpu.core_type = #tpu.core_type<tc>, window_params = [{transform_indices = @transform_0, window_bounds = array<i64: 2, 8, 128>}, {pipeline_mode = #tpu.pipeline_mode<synchronous>, transform_indices = @transform_1, window_bounds = array<i64: 128, 384>}, {pipeline_mode = #tpu.pipeline_mode<synchronous>, transform_indices = @transform_2, window_bounds = array<i64: 1, 384>}, {transform_indices = @transform_3, window_bounds = array<i64: 2, 8, 128>}]} {
    %c0 = arith.constant 0 : index
    %c0_0 = arith.constant 0 : index
    %c0_1 = arith.constant 0 : index
    %0 = vector.load %arg1[%c0, %c0_0, %c0_1] : memref<2x8x128xf32, #tpu.memory_space<vmem>>, vector<2x8x128xf32>
    %1 = vector.shape_cast %0 : vector<2x8x128xf32> to vector<16x128xf32>
    %c0_2 = arith.constant 0 : index
    %c0_3 = arith.constant 0 : index
    %2 = vector.load %arg2[%c0_2, %c0_3] : memref<128x384xf32, #tpu.memory_space<vmem>>, vector<128x384xf32>
    %cst = arith.constant dense<0.000000e+00> : vector<16x384xf32>
    %3 = tpu.matmul %1, %2, %cst {dimension_numbers = #tpu.dot_dimension_numbers<[1], [0], [0], [1], [0, 0, 1, 1], [], []>} : vector<16x128xf32>, vector<128x384xf32>, vector<16x384xf32> -> vector<16x384xf32>
    %c0_4 = arith.constant 0 : index
    %c0_5 = arith.constant 0 : index
    %4 = vector.load %arg3[%c0_4, %c0_5] : memref<1x384xf32, #tpu.memory_space<vmem>>, vector<1x384xf32>
    %5 = vector.broadcast %4 : vector<1x384xf32> to vector<16x384xf32>
    %6 = arith.addf %3, %5 : vector<16x384xf32>
    %7 = vector.shape_cast %6 : vector<16x384xf32> to vector<2x8x384xf32>
    %8 = vector.extract_strided_slice %7 {offsets = [0, 0, 0], sizes = [2, 8, 128], strides = [1, 1, 1]} : vector<2x8x384xf32> to vector<2x8x128xf32>
    %9 = vector.extract_strided_slice %7 {offsets = [0, 0, 128], sizes = [2, 8, 128], strides = [1, 1, 1]} : vector<2x8x384xf32> to vector<2x8x128xf32>
    %10 = vector.extract_strided_slice %7 {offsets = [0, 0, 256], sizes = [2, 8, 128], strides = [1, 1, 1]} : vector<2x8x384xf32> to vector<2x8x128xf32>
    %11 = vector.shape_cast %8 : vector<2x8x128xf32> to vector<2x8x1x128xf32>
    %12 = vector.shape_cast %9 : vector<2x8x128xf32> to vector<2x1x8x128xf32>
    %13 = vector.broadcast %11 : vector<2x8x1x128xf32> to vector<2x8x8x128xf32>
    %14 = vector.broadcast %12 : vector<2x1x8x128xf32> to vector<2x8x8x128xf32>
    %15 = arith.mulf %13, %14 : vector<2x8x8x128xf32>
    %cst_6 = arith.constant dense<0xFF800000> : vector<2x8x128xf32>
    %16 = vector.multi_reduction <maximumf>, %15, %cst_6 [2] : vector<2x8x8x128xf32> to vector<2x8x128xf32>
    %17 = vector.shape_cast %16 : vector<2x8x128xf32> to vector<2x8x1x128xf32>
    %18 = vector.broadcast %17 : vector<2x8x1x128xf32> to vector<2x8x8x128xf32>
    %19 = arith.subf %15, %18 : vector<2x8x8x128xf32>
    %20 = math.exp %19 : vector<2x8x8x128xf32>
    %cst_7 = arith.constant dense<0.000000e+00> : vector<2x8x128xf32>
    %21 = vector.multi_reduction <add>, %20, %cst_7 [2] : vector<2x8x8x128xf32> to vector<2x8x128xf32>
    %22 = vector.shape_cast %10 : vector<2x8x128xf32> to vector<2x1x8x128xf32>
    %23 = vector.broadcast %22 : vector<2x1x8x128xf32> to vector<2x8x8x128xf32>
    %24 = arith.mulf %20, %23 : vector<2x8x8x128xf32>
    %cst_8 = arith.constant dense<0.000000e+00> : vector<2x8x128xf32>
    %25 = vector.multi_reduction <add>, %24, %cst_8 [2] : vector<2x8x8x128xf32> to vector<2x8x128xf32>
    %26 = tpu.reciprocal %21 : vector<2x8x128xf32> -> vector<2x8x128xf32>
    %27 = arith.mulf %25, %26 : vector<2x8x128xf32>
    %cst_9 = arith.constant 0.000000e+00 : f32
    %28 = vector.broadcast %cst_9 : f32 to vector<2x8x128xf32>
    %29 = arith.cmpf oge, %27, %28 : vector<2x8x128xf32>
    %cst_10 = arith.constant 0.00999999977 : f32
    %30 = vector.broadcast %cst_10 : f32 to vector<2x8x128xf32>
    %31 = arith.mulf %30, %27 : vector<2x8x128xf32>
    %32 = arith.select %29, %27, %31 : vector<2x8x128xi1>, vector<2x8x128xf32>
    %c0_11 = arith.constant 0 : index
    %c0_12 = arith.constant 0 : index
    %c0_13 = arith.constant 0 : index
    %33 = vector.load %arg4[%c0_11, %c0_12, %c0_13] : memref<2x8x128xf32, #tpu.memory_space<vmem>>, vector<2x8x128xf32>
    tpu.vector_store %arg4[%c0_11, %c0_12, %c0_13], %32 {strides = array<i32>} : memref<2x8x128xf32, #tpu.memory_space<vmem>>, vector<2x8x128xf32>,
    return
  }
  func.func @transform_0(%arg0: i32) -> (i32, i32, i32) {
    %c0_i32 = arith.constant 0 : i32
    %c0_i32_0 = arith.constant 0 : i32
    %c0_i32_1 = arith.constant 0 : i32
    return %arg0, %c0_i32, %c0_i32_0 : i32, i32, i32
  }
  func.func @transform_1(%arg0: i32) -> (i32, i32) {
    %c0_i32 = arith.constant 0 : i32
    %c0_i32_0 = arith.constant 0 : i32
    %c0_i32_1 = arith.constant 0 : i32
    return %c0_i32, %c0_i32_0 : i32, i32
  }
  func.func @transform_2(%arg0: i32) -> (i32, i32) {
    %c0_i32 = arith.constant 0 : i32
    %c0_i32_0 = arith.constant 0 : i32
    %c0_i32_1 = arith.constant 0 : i32
    return %c0_i32, %c0_i32_0 : i32, i32
  }
  func.func @transform_3(%arg0: i32) -> (i32, i32, i32) {
    %c0_i32 = arith.constant 0 : i32
    %c0_i32_0 = arith.constant 0 : i32
    %c0_i32_1 = arith.constant 0 : i32
    return %arg0, %c0_i32, %c0_i32_0 : i32, i32, i32
  }
}

</mosaic_0001>

<bundles_post_ra>
// kernel: forward.1
= control target key start
LH: loop header
LB: loop body
LE: loop exit
PB: predicated region body
PF: predicated region fallthrough
CT: control target
= control target key end

     0   :  { %8 = vsyncpa [#allocation3], 0  ;;  %s2292_s0 = inlined_call_operand.hbm [shape: f32[4,8,128], index: 0, kind: input, shape index: {}]   ;;  %s2293_s1 = inlined_call_operand.hbm [shape: f32[128,384], index: 1, kind: input, shape index: {}]   ;;  %s2294_s2 = inlined_call_operand.hbm [shape: f32[1,384], index: 2, kind: input, shape index: {}]   ;;  %s2295_s3 = inlined_call_operand.hbm [shape: f32[4,8,128], index: 3, kind: output, shape index: {}]  }
   0x1   :  { %10 = vsyncpa [#allocation3 + $0x1], 0 }
   0x2   :  { %11 = vsyncpa [#allocation6], 0 }
   0x3   :  { %12 = vsyncpa [#allocation4], 0 }
   0x4   :  { %14 = vsyncpa [#allocation4 + $0x1], 0  ;;  %s1678_s12 = smov 0   ;;  %s1680_s13 = smov 0  }
   0x5   :  { %s1682_s14 = smov 0   ;;  %s1684_s15 = smov 0  }
   0x6 LB: > { %s1699_s16 = sadd.s32 4294967295, %s1644_s15   ;;  %s1212_s17 = sadd.s32 4294967294, %s1644_s15   ;;  %s1644_s15 = sphi %s1684_s15, %s2321_s15   ;;  %s1640_s14 = sphi %s1682_s14, %s2320_s14   ;;  %s1636_s13 = sphi %s1680_s13, %s2319_s13   ;;  %s1632_s12 = sphi %s1678_s12, %s2318_s12  }
   0x7   : > { %p40_p0 = scmp.ne.s32.totalorder %s1636_s13, %s1632_s12  ;;  %p2296_p1 = scmp.eq.s32.totalorder %s1699_s16, 0 }
   0x8   : > { %p112_p3 = scmp.eq.s32.totalorder %s1212_s17, 1  ;;  %p1213_p5 = scmp.ge.s32.totalorder %s1644_s15, 1 }
   0x9   : > { %p1708_p4 = por %p2296_p1, %p40_p0  ;;  %p119_p7 = scmp.lt.s32.totalorder %s1644_s15, 3 }
   0xa   : > { %p1713_p6 = por %p112_p3, %p40_p0  ;;  %s1646_s21 = smov [#allocation5]  }
   0xb   : > { %s2299_s18 = scalar_select %p1708_p4, 1, 0 }
   0xc   : > { %s2300_s19 = scalar_select %p1713_p6, 1, 0 }
   0xd   : > { %p1718_p8 = pnand %p1213_p5, %p119_p7  ;;  %s131_s22 = sshll.u32 %s1646_s21, 4  ;;  %s1722_s22 = int_to_ptr.vmem [resolvable:$true] %s131_s22 }
   0xe   : > { %s1647_s24 = smov [#allocation7]   ;;  %s1488_s28 = scalar_lea.hbm %s2293_s1, 6144 }
   0xf   : > { %p1361_p9 = pneg %p1718_p8  ;;  %s145_s25 = sshll.u32 %s1647_s24, 4  ;;  %s1733_s25 = int_to_ptr.vmem [resolvable:$true] %s145_s25 }
  0x10   : > { %p1489_p12 = scmp.ne.s32.totalorder %s2293_s1, %s1488_s28  ;;  %p1495_p5 = scmp.lt.u32.totalorder %s1488_s28, %s2293_s1 }
  0x11   : > { %p1729_p11 = pnand %p1361_p9, %p2296_p1 }
  0x13   : > { %p1490_p13 = pneg %p1729_p11 }
  0x15   : > { %p1491_p0 = pnand %p1490_p13, %p1489_p12 }
  0x17   : > { %p1492_p3 = pneg %p1491_p0 }
  0x19   : > { %p1497_p7 = pnand %p1495_p5, %p1492_p3 }
  0x1b   : > { %1500 = shalt.err (!%p1497_p7)
}
  0x1c   : > { %s1501_s6 = scalar_lea.vmem %s1722_s22, 6144  ;;  %p1509_p2 = scmp.lt.s32.totalorder %s1722_s22, %s1722_s22 }
  0x1d   : > { %p1502_p9 = scmp.ne.s32.totalorder %s1722_s22, %s1501_s6  ;;  %p1510_p12 = scmp.lt.s32.totalorder %s1501_s6, %s1501_s6 }
  0x1f   : > { %p1504_p10 = pnand %p1502_p9, %p1490_p13  ;;  %p1511_p0 = por %p1510_p12, %p1509_p2 }
  0x21   : > { %p1505_p1 = pneg %p1504_p10 }
  0x23   : > { %p1512_p6 = pnand %p1511_p0, %p1505_p1 }
  0x25   : > { %1515 = shalt.err (!%p1512_p6)
}
  0x26   : > { %s1648_s7 = smov 384   ;;  %s1649_s8 = smov 24  }
  0x27   : > { %1364 = dma.hbm_to_vmem [thread:$0]  (!%p1729_p11), %s2293_s1, 6144, %s1722_s22, [#allocation6], %s1648_s7, %s1648_s7, %s1649_s8  }
  0x28   : > { %s1516_s21 = scalar_lea.hbm %s2294_s2, 48 }
  0x29   : > { %p1517_p2 = scmp.ne.s32.totalorder %s2294_s2, %s1516_s21  ;;  %p1523_p10 = scmp.lt.u32.totalorder %s1516_s21, %s2294_s2 }
  0x2b   : > { %p1519_p1 = pnand %p1517_p2, %p1490_p13 }
  0x2d   : > { %p1520_p6 = pneg %p1519_p1 }
  0x2f   : > { %p1525_p3 = pnand %p1523_p10, %p1520_p6 }
  0x31   : > { %1528 = shalt.err (!%p1525_p3)
}
  0x32   : > { %s1529_s22 = scalar_lea.vmem %s1733_s25, 48  ;;  %s1536_s29 = scalar_lea.vmem %s1733_s25, 64 }
  0x33   : > { %p1530_p5 = scmp.ne.s32.totalorder %s1733_s25, %s1529_s22  ;;  %p1537_p12 = scmp.lt.s32.totalorder %s1733_s25, %s1733_s25 }
  0x34   : > { %p1538_p0 = scmp.lt.s32.totalorder %s1536_s29, %s1529_s22 }
  0x35   : > { %p1532_p7 = pnand %p1530_p5, %p1490_p13 }
  0x36   : > { %p1539_p2 = por %p1538_p0, %p1537_p12 }
  0x37   : > { %p1533_p9 = pneg %p1532_p7 }
  0x39   : > { %p1540_p1 = pnand %p1539_p2, %p1533_p9 }
  0x3b   : > { %1543 = shalt.err (!%p1540_p1)
}
  0x3c   : > { %1367 = dma.hbm_to_vmem [thread:$0]  (!%p1729_p11), %s2294_s2, 48, %s1733_s25, [#allocation6]  }
  0x3d   : > { %s1789_s5 = sadd.s32 1, %s1644_s15   ;;  %s27_s23 = sadd.s32 1, %s1640_s14 }
  0x3e   : > { %s24_s6 = ssub.s32 %s1644_s15, %s1789_s5  ;;  %p34_p13 = scmp.ne.s32.totalorder %s1640_s14, %s1636_s13 }
  0x3f   : > { %p25_p6 = scmp.eq.s32.totalorder %s24_s6, 0  ;;  %p35_p10 = scmp.eq.s32.totalorder %s1644_s15, 0 }
  0x40   : > { %p2303_p3 = scmp.eq.s32.totalorder %s1699_s16, 1  ;;  %p1378_p7 = scmp.lt.s32.totalorder %s1644_s15, 2 }
  0x41   : > { %s1805_s8 = scalar_select %p25_p6, %s1640_s14, %s27_s23  }
  0x42   : > { %p1799_p5 = por %p2303_p3, %p34_p13  ;;  %p36_p9 = por %p35_p10, %p34_p13 }
  0x43   : > { %s156_s9 = sand.u32 1, %s1640_s14   ;;  %s1230_s25 = sshll.u32 %s1644_s15, 8 }
  0x44   : > { %s2304_s7 = scalar_select %p1799_p5, 1, 0 }
  0x45   : > { %s1217_s10 = sshll.u32 %s156_s9, 4  ;;  %s1812_s21 = scalar_lea.hbm %s2292_s0, %s1230_s25 }
  0x46   : > { %s160_s24 = scalar_lea.vmem [#allocation2], %s1217_s10  ;;  %p1816_p11 = pnand %p1378_p7, %p36_p9 }
  0x47   : > { %s167_s26 = sshll.u32 %s160_s24, 4  ;;  %s1820_s28 = scalar_lea.sflag [#allocation3], %s156_s9  ;;  %s1814_s26 = int_to_ptr.vmem [resolvable:$true] %s167_s26 }
  0x48   : > { %s1544_s22 = scalar_lea.hbm %s1812_s21, 256  ;;  %p1546_p0 = pneg %p1816_p11 }
  0x49   : > { %p1545_p12 = scmp.ne.s32.totalorder %s1812_s21, %s1544_s22  ;;  %s1549_s4 = scalar_lea.hbm %s2292_s0, 512 }
  0x4a   : > { %p1550_p13 = scmp.lt.u32.totalorder %s1812_s21, %s2292_s0  ;;  %p1551_p6 = scmp.lt.u32.totalorder %s1549_s4, %s1544_s22 }
  0x4b   : > { %p1547_p2 = pnand %p1546_p0, %p1545_p12  ;;  %p1553_p3 = scmp.lt.u32.totalorder %s1544_s22, %s1812_s21 }
  0x4c   : > { %p1552_p10 = por %p1551_p6, %p1550_p13 }
  0x4d   : > { %p1548_p1 = pneg %p1547_p2 }
  0x4e   : > { %p1554_p7 = por %p1553_p3, %p1552_p10 }
  0x50   : > { %p1555_p9 = pnand %p1554_p7, %p1548_p1 }
  0x52   : > { %1558 = shalt.err (!%p1555_p9)
}
  0x53   : > { %s1559_s9 = scalar_lea.vmem %s1814_s26, 256  ;;  %s1650_s10 = smov [#allocation2]  }
  0x54   : > { %p1560_p12 = scmp.ne.s32.totalorder %s1814_s26, %s1559_s9  ;;  %s1564_s25 = sshll.u32 %s1650_s10, 4  ;;  %s1565_s25 = int_to_ptr.vmem [resolvable:$false] %s1564_s25 }
  0x55   : > { %s1566_s11 = scalar_lea.vmem %s1565_s25, 512  ;;  %p1567_p4 = scmp.lt.s32.totalorder %s1814_s26, %s1565_s25 }
  0x56   : > { %p1562_p2 = pnand %p1560_p12, %p1546_p0  ;;  %p1568_p13 = scmp.lt.s32.totalorder %s1566_s11, %s1559_s9 }
  0x58   : > { %p1563_p5 = pneg %p1562_p2  ;;  %p1569_p6 = por %p1568_p13, %p1567_p4 }
  0x5a   : > { %p1570_p10 = pnand %p1569_p6, %p1563_p5 }
  0x5c   : > { %1573 = shalt.err (!%p1570_p10)
}
  0x5d   : > { %s1651_s17 = smov 128   ;;  %s1652_s24 = smov 8  }
  0x5e   : > { %1371 = dma.hbm_to_vmem [thread:$0]  (!%p1816_p11), %s1812_s21, 256, %s1814_s26, %s1820_s28, %s1651_s17, %s1651_s17, %s1652_s24  }
  0x5f   : > { %179 = sbr.rel (%p1718_p8) target bundleno = 503 (0x1f7), region = 32  ;;  %s1851_s22 = sand.u32 (!%p1718_p8), 1, %s1636_s13  }
  0x60   : > { %s1221_s29 = sshll.u32 (!%p1718_p8), %s1851_s22, 4  ;;  %s182_s30 = scalar_lea.sflag (!%p1718_p8), [#allocation3], %s1851_s22 }
  0x61   : > { %s1857_s4 = scalar_lea.vmem (!%p1718_p8), [#allocation2], %s1221_s29  ;;  %p2306_p4 = scmp.ne.s32.totalorder (!%p1718_p8), %s2299_s18, 0 }
  0x66   : > { %1619 = dma.done.wait (%p2306_p4), %s182_s30, 256  }
  0x67   : > { %1621 = vsyncadd (%p2306_p4), %s182_s30, 4294967040  ;;  %p2307_p5 = scmp.eq.s32.totalorder %s1699_s16, 0 }
  0x69   : > { %1623 = dma.done.wait (%p2307_p5), [#allocation6], 6192   ;;  %p2308_p8 = pmov %p2307_p5 }
  0x6a   : > { %v1653_v0 = vmov 0.0   ;;  %v221_v1 = vld [vmem:[#allocation5 + $0x8] sm:$0xff]  ;;  %v224_v2 = vld [vmem:[#allocation5 + $0x20] sm:$0xff]  ;;  %v223_v5 = vld [vmem:[#allocation5 + $0x18] sm:$0xff]  ;;  %vm1081_vm2 = vcmask 1041409   ;;  %vm1083_vm4 = vcmask 1042434  }
  0x6b   : > { %1625 = vsyncadd (%p2308_p8), [#allocation6], 4294961104  ;;  %349 = vmatprep.mubr.f32.mxu0 %v1653_v0  ;;  %v220_v3 = vld [vmem:[#allocation5] sm:$0xff]  ;;  %v1285_v4 = vpack.c.bf16 %v224_v2, %v221_v1  ;;  %v227_v6 = vld [vmem:[#allocation5 + $0x38] sm:$0xff]  ;;  %vm1085_vm6 = vcmask 1043459   ;;  %vm1087_vm8 = vcmask 1044484  }
  0x6c   : > { %v230_v7 = vld [vmem:[#allocation5 + $0x50] sm:$0xff]  ;;  %v1287_v8 = vpack.c.bf16 %v223_v5, %v220_v3  ;;  %v229_v11 = vld [vmem:[#allocation5 + $0x48] sm:$0xff]  ;;  %v236_v13 = vld [vmem:[#allocation5 + $0x80] sm:$0xff]  ;;  %vm1089_vm10 = vcmask 1045509   ;;  %vm1091_vm12 = vcmask 1046534   ;;  %s1231_s18 = sshll.u32 %s1699_s16, 8 }
  0x6d   : > { %v1289_v9 = vpack.c.bf16 %v230_v7, %v227_v6  ;;  %v226_v10 = vld [vmem:[#allocation5 + $0x30] sm:$0xff]  ;;  %v233_v12 = vld [vmem:[#allocation5 + $0x68] sm:$0xff]  ;;  %1286 = vmatprep.subr.bf16.mxu0 %v1285_v4  ;;  %v232_v16 = vld [vmem:[#allocation5 + $0x60] sm:$0xff]  ;;  %s215_s20 = scalar_lea.vmem [#allocation8], %s1221_s29  ;;  %s2243_s27 = scalar_lea.hbm %s2295_s3, %s1231_s18 }
  0x6e   : > { %1288 = vmatpush1.bf16.msra.mxu0 %v1287_v8  ;;  %v1291_v14 = vpack.c.bf16 %v229_v11, %v226_v10  ;;  %v1293_v15 = vpack.c.bf16 %v236_v13, %v233_v12  ;;  %v235_v17 = vld [vmem:[#allocation5 + $0x78] sm:$0xff]  ;;  %v242_v19 = vld [vmem:[#allocation5 + $0xb0] sm:$0xff]  ;;  %v241_v23 = vld [vmem:[#allocation5 + $0xa8] sm:$0xff]  ;;  %v270_v12 = vlaneseq  ;;  %s1120_s21 = sshll.u32 %s215_s20, 4  ;;  %s1107_s28 = scalar_lea.sflag [#allocation4], %s1851_s22  ;;  %s2245_s21 = int_to_ptr.vmem [resolvable:$true] %s1120_s21 }
  0x6f   : > { %1290 = vmatprep.subr.bf16.mxu0 %v1289_v9  ;;  %v239_v18 = vld [vmem:[#allocation5 + $0x98] sm:$0xff]  ;;  %v1295_v20 = vpack.c.bf16 %v235_v17, %v232_v16  ;;  %v238_v22 = vld [vmem:[#allocation5 + $0x90] sm:$0xff]  ;;  %v245_v24 = vld [vmem:[#allocation5 + $0xc8] sm:$0xff]  ;;  %s1574_s23 = scalar_lea.vmem %s2245_s21, 256  ;;  %p2315_p0 = scmp.ne.s32.totalorder %s2304_s7, 0 }
  0x70   : > { %v1297_v21 = vpack.c.bf16 %v242_v19, %v239_v18  ;;  %v248_v25 = vld [vmem:[#allocation5 + $0xe0] sm:$0xff]  ;;  %v222_v27 = vld [vmem:[#allocation5 + $0x10] sm:$0xff]  ;;  %v225_v28 = vld [vmem:[#allocation5 + $0x28] sm:$0xff]  ;;  %v1299_v29 = vpack.c.bf16 %v241_v23, %v238_v22  ;;  %v1875_v13 = vshrl.u32 %v270_v12, 7  ;;  %p1575_p11 = scmp.ne.s32.totalorder %s2245_s21, %s1574_s23  ;;  %s1655_s6 = smov [#allocation8]  }
  0x71   : > { %v1869_v26 = vld [vmem:[%s1857_s4] sm:$0xff]  ;;  %v1317_v31 = vpack.c.bf16 %v225_v28, %v222_v27  ;;  %v231_v33 = vld [vmem:[#allocation5 + $0x58] sm:$0xff]  ;;  %v1301_v34 = vpack.c.bf16 %v248_v25, %v245_v24  ;;  %v237_v38 = vld [vmem:[#allocation5 + $0x88] sm:$0xff]  ;;  %s1578_s9 = sshll.u32 %s1655_s6, 4  ;;  %s1579_s9 = int_to_ptr.vmem [resolvable:$false] %s1578_s9 }
  0x72   : > { %1292 = vmatpush1.bf16.msra.mxu0 %v1291_v14  ;;  %1282 = vmatprep.mubr.f32.mxu1 %v1869_v26  ;;  %v244_v30 = vld [vmem:[#allocation5 + $0xc0] sm:$0xff]  ;;  %v247_v35 = vld [vmem:[#allocation5 + $0xd8] sm:$0xff]  ;;  %v234_v37 = vld [vmem:[#allocation5 + $0x70] sm:$0xff]  ;;  %v1654_v14 = vmov 1966171168   ;;  %v1878_v16 = vsub.s32 0, %v1875_v13  ;;  %p1576_p1 = pnand %p1575_p11, %p2315_p0  ;;  %p1581_p7 = scmp.lt.s32.totalorder %s2245_s21, %s1579_s9 }
  0x73   : > { %1294 = vmatprep.subr.bf16.mxu0 %v1293_v15  ;;  %v228_v32 = vld [vmem:[#allocation5 + $0x40] sm:$0xff]  ;;  %v251_v39 = vld [vmem:[#allocation5 + $0xf8] sm:$0xff]  ;;  %v254_v40 = vld [vmem:[#allocation5 + $0x110] sm:$0xff]  ;;  %1318 = vmatprep.subr.bf16.mxu1 %v1317_v31  ;;  %v1303_v41 = vpack.c.bf16 %v247_v35, %v244_v30  ;;  %v1325_v43 = vpack.c.bf16 %v237_v38, %v234_v37  ;;  %v441_v15 = vunpack.c.l.s4 %v1654_v14  ;;  %v280_v38 = vsub.s32 2, %v1875_v13  ;;  %s1580_s10 = scalar_lea.vmem %s1579_s9, 512 }
  0x74   : > { %v1321_v36 = vpack.c.bf16 %v231_v33, %v228_v32  ;;  %1320 = vmatpush3.bf16.msra.mxu1 %v1317_v31  ;;  %v250_v42 = vld [vmem:[#allocation5 + $0xf0] sm:$0xff]  ;;  %v1305_v44 = vpack.c.bf16 %v254_v40, %v251_v39  ;;  %v253_v45 = vld [vmem:[#allocation5 + $0x108] sm:$0xff]  ;;  %v240_v46 = vld [vmem:[#allocation5 + $0xa0] sm:$0xff]  ;;  %p1577_p3 = pneg %p1576_p1  ;;  %p1582_p9 = scmp.lt.s32.totalorder %s1580_s10, %s1574_s23 }
  0x75   : > { %v243_v47 = vld [vmem:[#allocation5 + $0xb8] sm:$0xff]  ;;  %v257_v48 = vld [vmem:[#allocation5 + $0x128] sm:$0xff]  ;;  %v260_v49 = vld [vmem:[#allocation5 + $0x140] sm:$0xff]  ;;  %v1307_v50 = vpack.c.bf16 %v253_v45, %v250_v42  ;;  %v442_v18 = vunpack.c.0.s8 %v441_v15 }
  0x76   : > { %1296 = vmatpush1.bf16.msra.mxu0 %v1295_v20  ;;  %1322 = vmatprep.subr.bf16.mxu1 %v1321_v36  ;;  %v256_v51 = vld [vmem:[#allocation5 + $0x120] sm:$0xff]  ;;  %v1329_v52 = vpack.c.bf16 %v243_v47, %v240_v46  ;;  %v1309_v53 = vpack.c.bf16 %v260_v49, %v257_v48  ;;  %v259_v54 = vld [vmem:[#allocation5 + $0x138] sm:$0xff]  ;;  %v246_v55 = vld [vmem:[#allocation5 + $0xd0] sm:$0xff]  ;;  %p1583_p12 = por %p1582_p9, %p1581_p7 }
  0x77   : > { %1298 = vmatprep.subr.bf16.mxu0 %v1297_v21  ;;  %v249_v56 = vld [vmem:[#allocation5 + $0xe8] sm:$0xff]  ;;  %v263_v57 = vld [vmem:[#allocation5 + $0x158] sm:$0xff]  ;;  %v266_v58 = vld [vmem:[#allocation5 + $0x170] sm:$0xff]  ;;  %v1311_v59 = vpack.c.bf16 %v259_v54, %v256_v51  ;;  %v1885_v19 = vsub.s32 %v442_v18, %v1875_v13  ;;  %v276_v21 = vsub.s32 1, %v1875_v13 }
  0x78   : > { %1324 = vmatpush3.bf16.msra.mxu1 %v1321_v36  ;;  %v262_v60 = vld [vmem:[#allocation5 + $0x150] sm:$0xff]  ;;  %v1333_v61 = vpack.c.bf16 %v249_v56, %v246_v55  ;;  %v1313_v62 = vpack.c.bf16 %v266_v58, %v263_v57  ;;  %v265_v63 = vld [vmem:[#allocation5 + $0x168] sm:$0xff]  ;;  %v252_v1 = vld [vmem:[#allocation5 + $0x100] sm:$0xff]  ;;  %p1584_p2 = pnand %p1583_p12, %p1577_p3 }
  0x79   : > { %1326 = vmatprep.subr.bf16.mxu1 %v1325_v43  ;;  %v255_v2 = vld [vmem:[#allocation5 + $0x118] sm:$0xff]  ;;  %v1315_v3 = vpack.c.bf16 %v265_v63, %v262_v60  ;;  %v258_v5 = vld [vmem:[#allocation5 + $0x130] sm:$0xff]  ;;  %v261_v6 = vld [vmem:[#allocation5 + $0x148] sm:$0xff] }
  0x7a   : > { %1300 = vmatpush1.bf16.msra.mxu0 %v1299_v29  ;;  %v1337_v4 = vpack.c.bf16 %v255_v2, %v252_v1  ;;  %v1341_v7 = vpack.c.bf16 %v261_v6, %v258_v5  ;;  %v264_v8 = vld [vmem:[#allocation5 + $0x160] sm:$0xff]  ;;  %v267_v9 = vld [vmem:[#allocation5 + $0x178] sm:$0xff] }
  0x7b   : > { %1302 = vmatprep.subr.bf16.mxu0 %v1301_v34  ;;  %v219_v10 = vld [vmem:[%s1857_s4 + $0x8] sm:$0xff]  ;;  %v1345_v11 = vpack.c.bf16 %v267_v9, %v264_v8  ;;  %v1880_v17 = vld [vmem:[#allocation7] sm:$0x7] }
  0x7c   : > { %1328 = vmatpush3.bf16.msra.mxu1 %v1325_v43 }
  0x7d   : > { %1330 = vmatprep.subr.bf16.mxu1 %v1329_v52 }
  0x7e   : > { %1304 = vmatpush1.bf16.msra.mxu0 %v1303_v41 }
  0x7f   : > { %1306 = vmatprep.subr.bf16.mxu0 %v1305_v44 }
  0x80   : > { %1332 = vmatpush3.bf16.msra.mxu1 %v1329_v52 }
  0x81   : > { %1334 = vmatprep.subr.bf16.mxu1 %v1333_v61 }
  0x82   : > { %1308 = vmatpush1.bf16.msra.mxu0 %v1307_v50 }
  0x83   : > { %1310 = vmatprep.subr.bf16.mxu0 %v1309_v53 }
  0x84   : > { %1336 = vmatpush3.bf16.msra.mxu1 %v1333_v61 }
  0x85   : > { %1338 = vmatprep.subr.bf16.mxu1 %v1337_v4 }
  0x86   : > { %1312 = vmatpush1.bf16.msra.mxu0 %v1311_v59 }
  0x87   : > { %1314 = vmatprep.subr.bf16.mxu0 %v1313_v62 }
  0x88   : > { %1340 = vmatpush3.bf16.msra.mxu1 %v1337_v4 }
  0x89   : > { %1342 = vmatprep.subr.bf16.mxu1 %v1341_v7 }
  0x8a   : > { %1316 = vmatpush1.bf16.msra.mxu0 %v1315_v3 }
  0x8c   : > { %1344 = vmatpush3.bf16.msra.mxu1 %v1341_v7 }
  0x8d   : > { %350 = vmatmul.mubr.f32.vlgmr.msra.gmra.mrb[0].mxu0 %v1869_v26  ;;  %1346 = vmatprep.subr.bf16.mxu1 %v1345_v11  ;;  %v1890_v26 = vrot.slane %v1880_v17, %v276_v21 }
  0x8e   : > { %355 = vmatprep.mubr.f32.mxu0 %v1653_v0  ;;  %v273_v0 = vrot.slane %v1880_v17, %v1878_v16 }
  0x90   : > { %1348 = vmatpush3.bf16.msra.mxu1 %v1345_v11 }
  0x91   : > { %356 = vmatmul.mubr.f32.gmra.mrb[2].mxu0 %v219_v10 }
  0x93   : > { %1283 = vmatmul.mubr.f32.vlgmr.msra.gmra.mrb[0].mxu1 %v219_v10 }
 0x160   : > { %v351_v20 = vpop.f32.mrb[0].mxu0 }
 0x161   : > { %v352_v22 = vadd.f32 %v351_v20, %v273_v0  ;;  %v353_v23 = vpop.f32.mrb[1].mxu0 }
 0x162   : > { %v354_v37 = vadd.f32 %v353_v23, %v1890_v26 }
 0x163   : > { %v439_v24 = vcombine.high %v352_v22, %v352_v22  ;;  %v446_v25 = vrot.slane %v352_v22, %v1885_v19 }
 0x164   : > { %v357_v27 = vpop.f32.mrb[2].mxu0 }
 0x165   : > { %v453_v28 = vrot.slane %v439_v24, %v1885_v19  ;;  %v454_v29 = vcombine.high %v446_v25, %v446_v25  ;;  %v462_v30 = vrot.slane %v446_v25, %v1885_v19  ;;  %v1894_v31 = vpop.f32.mrb[3].mxu0  ;;  %v1907_v46 = vadd.f32 %v357_v27, %v273_v0 }
 0x166   : > { %v1912_v51 = vpop.f32.mrb[0].mxu1 }
 0x167   : > { %v455_v32 = vcombine.high %v453_v28, %v453_v28  ;;  %v469_v33 = vrot.slane %v453_v28, %v1885_v19  ;;  %v476_v34 = vrot.slane %v454_v29, %v1885_v19  ;;  %v484_v35 = vcombine.high %v462_v30, %v462_v30  ;;  %v1921_v56 = vpop.f32.mrb[1].mxu1 }
 0x168   : > { %v540_v36 = vrot.slane %v462_v30, %v1878_v16  ;;  %v488_v24 = vcombine.high %v1907_v46, %v1907_v46 }
 0x169   : > { %v483_v39 = vrot.slane %v455_v32, %v1885_v19  ;;  %v485_v40 = vcombine.high %v469_v33, %v469_v33  ;;  %v486_v41 = vcombine.high %v476_v34, %v476_v34  ;;  %v544_v42 = vrot.slane %v476_v34, %v1878_v16 }
 0x16a   : > { %v548_v43 = vrot.slane %v484_v35, %v1878_v16  ;;  %v556_v44 = vrot.slane %v469_v33, %v1878_v16  ;;  %v1905_v45 = vmul.f32 %v540_v36, %v354_v37 }
 0x16b   : > { %v487_v47 = vcombine.high %v483_v39, %v483_v39  ;;  %v552_v48 = vrot.slane %v486_v41, %v1878_v16  ;;  %v560_v49 = vrot.slane %v483_v39, %v1878_v16  ;;  %v564_v50 = vrot.slane %v485_v40, %v1878_v16 }
 0x16c   : > { %v1914_v52 = vmul.f32 %v544_v42, %v354_v37  ;;  %v1916_v53 = vmul.f32 %v548_v43, %v354_v37  ;;  %v1918_v54 = vmul.f32 %v556_v44, %v354_v37  ;;  %v633_v55 = vrot.slane %v1905_v45, 4 }
 0x16d   : > { %v568_v57 = vrot.slane %v487_v47, %v1878_v16  ;;  %v1924_v58 = vmul.f32 %v552_v48, %v354_v37  ;;  %v1926_v59 = vmul.f32 %v560_v49, %v354_v37  ;;  %v1928_v60 = vmul.f32 %v564_v50, %v354_v37 }
 0x16e   : > { %v634_v61 = vmax.f32 %v1905_v45, %v633_v55  ;;  %v639_v62 = vrot.slane %v1914_v52, 4  ;;  %v645_v63 = vrot.slane %v1916_v53, 4  ;;  %v657_v1 = vrot.slane %v1918_v54, 4 }
 0x16f   : > { %v1934_v2 = vmul.f32 %v568_v57, %v354_v37  ;;  %v651_v3 = vrot.slane %v1924_v58, 4  ;;  %v663_v4 = vrot.slane %v1926_v59, 4  ;;  %v669_v5 = vrot.slane %v1928_v60, 4 }
 0x170   : > { %v635_v6 = vrot.slane %v634_v61, 2  ;;  %v640_v7 = vmax.f32 %v1914_v52, %v639_v62  ;;  %v646_v8 = vmax.f32 %v1916_v53, %v645_v63  ;;  %v658_v9 = vmax.f32 %v1918_v54, %v657_v1 }
 0x171   : > { %v652_v10 = vmax.f32 %v1924_v58, %v651_v3  ;;  %v664_v11 = vmax.f32 %v1926_v59, %v663_v4  ;;  %v670_v12 = vmax.f32 %v1928_v60, %v669_v5  ;;  %v675_v14 = vrot.slane %v1934_v2, 4 }
 0x172   : > { %v636_v15 = vmax.f32 %v634_v61, %v635_v6  ;;  %v641_v18 = vrot.slane %v640_v7, 2  ;;  %v647_v0 = vrot.slane %v646_v8, 2  ;;  %v659_v20 = vrot.slane %v658_v9, 2 }
 0x173   : > { %v653_v21 = vrot.slane %v652_v10, 2  ;;  %v665_v22 = vrot.slane %v664_v11, 2  ;;  %v671_v23 = vrot.slane %v670_v12, 2  ;;  %v676_v34 = vmax.f32 %v1934_v2, %v675_v14 }
 0x174   : > { %v637_v25 = vrot.slane %v636_v15, 1  ;;  %v642_v27 = vmax.f32 %v640_v7, %v641_v18  ;;  %v648_v28 = vmax.f32 %v646_v8, %v647_v0  ;;  %v660_v29 = vmax.f32 %v658_v9, %v659_v20 }
 0x175   : > { %v654_v30 = vmax.f32 %v652_v10, %v653_v21  ;;  %v666_v32 = vmax.f32 %v664_v11, %v665_v22  ;;  %v672_v33 = vmax.f32 %v670_v12, %v671_v23  ;;  %v495_v43 = vrot.slane %v1907_v46, %v1885_v19 }
 0x176   : > { %v638_v35 = vmax.f32 %v636_v15, %v637_v25  ;;  %v643_v36 = vrot.slane %v642_v27, 1  ;;  %v649_v37 = vrot.slane %v648_v28, 1  ;;  %v661_v39 = vrot.slane %v660_v29, 1 }
 0x177   : > { %v655_v40 = vrot.slane %v654_v30, 1  ;;  %v667_v41 = vrot.slane %v666_v32, 1  ;;  %v673_v42 = vrot.slane %v672_v33, 1  ;;  %v677_v61 = vrot.slane %v676_v34, 2 }
 0x178   : > { %v644_v44 = vmax.f32 %v642_v27, %v643_v36  ;;  %v650_v47 = vmax.f32 %v648_v28, %v649_v37  ;;  %v662_v48 = vmax.f32 %v660_v29, %v661_v39  ;;  %v729_v49 = vsub.f32 %v1905_v45, %v638_v35 }
 0x179   : > { %v656_v50 = vmax.f32 %v654_v30, %v655_v40  ;;  %v668_v55 = vmax.f32 %v666_v32, %v667_v41  ;;  %v674_v57 = vmax.f32 %v672_v33, %v673_v42  ;;  %v502_v3 = vrot.slane %v488_v24, %v1885_v19 }
 0x17a   : > { %v730_v62 = vsub.f32 %v1914_v52, %v644_v44  ;;  %v731_v63 = vsub.f32 %v1916_v53, %v650_v47  ;;  %v745_v1 = vmul.f32 1.442695, %v729_v49  ;;  %v733_v46 = vsub.f32 %v1918_v54, %v662_v48 }
 0x17b   : > { %v732_v4 = vsub.f32 %v1924_v58, %v656_v50  ;;  %v734_v5 = vsub.f32 %v1926_v59, %v668_v55  ;;  %v735_v6 = vsub.f32 %v1928_v60, %v674_v57  ;;  %v1962_v7 = vrot.slane %v1880_v17, %v280_v38 }
 0x17c   : > { %v747_v45 = vmul.f32 1.442695, %v730_v62  ;;  %v1964_v52 = vmax.f32 %v676_v34, %v677_v61  ;;  %1424 = vpow2.f32 %v745_v1  ;;  %v749_v53 = vmul.f32 1.442695, %v731_v63 }
 0x17d   : > { %v360_v8 = vadd.f32 %v1894_v31, %v1890_v26  ;;  %v751_v58 = vmul.f32 1.442695, %v732_v4  ;;  %v503_v9 = vcombine.high %v495_v43, %v495_v43  ;;  %v504_v54 = vcombine.high %v502_v3, %v502_v3 }
 0x17e   : > { %v511_v59 = vrot.slane %v495_v43, %v1885_v19  ;;  %v753_v10 = vmul.f32 1.442695, %v733_v46  ;;  %v755_v60 = vmul.f32 1.442695, %v734_v5  ;;  %v757_v11 = vmul.f32 1.442695, %v735_v6 }
 0x17f   : > { %v518_v13 = vrot.slane %v502_v3, %v1885_v19  ;;  %1426 = vpow2.f32 %v747_v45  ;;  %v525_v17 = vrot.slane %v503_v9, %v1885_v19  ;;  %v532_v38 = vrot.slane %v504_v54, %v1885_v19 }
 0x180   : > { %v533_v12 = vcombine.high %v511_v59, %v511_v59  ;;  %1428 = vpow2.f32 %v749_v53  ;;  %v572_v26 = vrot.slane %v511_v59, %v1878_v16 }
 0x181   : > { %v534_v14 = vcombine.high %v518_v13, %v518_v13  ;;  %v588_v31 = vrot.slane %v518_v13, %v1878_v16  ;;  %1430 = vpow2.f32 %v751_v58  ;;  %v535_v15 = vcombine.high %v525_v17, %v525_v17 }
 0x182   : > { %v536_v18 = vcombine.high %v532_v38, %v532_v38  ;;  %v576_v0 = vrot.slane %v525_v17, %v1878_v16  ;;  %1432 = vpow2.f32 %v753_v10  ;;  %v580_v20 = vrot.slane %v533_v12, %v1878_v16 }
 0x183   : > { %v592_v21 = vrot.slane %v532_v38, %v1878_v16  ;;  %v596_v22 = vrot.slane %v534_v14, %v1878_v16  ;;  %1434 = vpow2.f32 %v755_v60  ;;  %v584_v19 = vrot.slane %v535_v15, %v1878_v16 }
 0x184   : > { %v600_v23 = vrot.slane %v536_v18, %v1878_v16  ;;  %v1980_v24 = vmul.f32 %v572_v26, %v360_v8  ;;  %v1982_v25 = vmul.f32 %v576_v0, %v360_v8  ;;  %v1984_v27 = vmul.f32 %v580_v20, %v360_v8 }
 0x185   : > { %v1986_v28 = vmul.f32 %v588_v31, %v360_v8  ;;  %v1988_v29 = vmul.f32 %v592_v21, %v360_v8  ;;  %v1990_v30 = vmul.f32 %v584_v19, %v360_v8  ;;  %v1992_v32 = vmul.f32 %v596_v22, %v360_v8 }
 0x186   : > { %v1994_v33 = vmul.f32 %v600_v23, %v360_v8  ;;  %v681_v34 = vrot.slane %v1980_v24, 4  ;;  %v1997_v35 = vpop.eup %1424  ;;  %v687_v16 = vrot.slane %v1982_v25, 4  ;;  %v693_v36 = vrot.slane %v1984_v27, 4 }
 0x187   : > { %v705_v37 = vrot.slane %v1986_v28, 4  ;;  %v711_v39 = vrot.slane %v1988_v29, 4  ;;  %v699_v41 = vrot.slane %v1990_v30, 4  ;;  %v717_v42 = vrot.slane %v1992_v32, 4 }
 0x188   : > { %v682_v40 = vmax.f32 %v1980_v24, %v681_v34  ;;  %v723_v43 = vrot.slane %v1994_v33, 4  ;;  %v688_v44 = vmax.f32 %v1982_v25, %v687_v16  ;;  %v694_v47 = vmax.f32 %v1984_v27, %v693_v36 }
 0x189   : > { %v706_v48 = vmax.f32 %v1986_v28, %v705_v37  ;;  %v712_v49 = vmax.f32 %v1988_v29, %v711_v39  ;;  %v2011_v50 = vpop.eup %1426  ;;  %1436 = vpow2.f32 %v757_v11  ;;  %v700_v57 = vmax.f32 %v1990_v30, %v699_v41 }
 0x18a   : > { %v683_v55 = vrot.slane %v682_v40, 2  ;;  %v718_v61 = vmax.f32 %v1992_v32, %v717_v42  ;;  %v2015_v62 = vpop.eup %1428  ;;  %v689_v63 = vrot.slane %v688_v44, 2  ;;  %v695_v1 = vrot.slane %v694_v47, 2 }
 0x18b   : > { %v707_v3 = vrot.slane %v706_v48, 2  ;;  %v713_v4 = vrot.slane %v712_v49, 2  ;;  %v2017_v46 = vpop.eup %1430  ;;  %v701_v6 = vrot.slane %v700_v57, 2  ;;  %v724_v53 = vmax.f32 %v1994_v33, %v723_v43 }
 0x18c   : > { %v684_v5 = vmax.f32 %v682_v40, %v683_v55  ;;  %v719_v45 = vrot.slane %v718_v61, 2  ;;  %v2020_v8 = vpop.eup %1432  ;;  %v690_v58 = vmax.f32 %v688_v44, %v689_v63  ;;  %v696_v9 = vmax.f32 %v694_v47, %v695_v1 }
 0x18d   : > { %v708_v54 = vmax.f32 %v706_v48, %v707_v3  ;;  %v714_v59 = vmax.f32 %v712_v49, %v713_v4  ;;  %v2022_v10 = vpop.eup %1434  ;;  %v679_v60 = vrot.slane %v1964_v52, 1  ;;  %v702_v13 = vmax.f32 %v700_v57, %v701_v6 }
 0x18e   : > { %v685_v11 = vrot.slane %v684_v5, 1  ;;  %v720_v17 = vmax.f32 %v718_v61, %v719_v45  ;;  %v691_v38 = vrot.slane %v690_v58, 1  ;;  %v697_v12 = vrot.slane %v696_v9, 1 }
 0x18f   : > { %v709_v14 = vrot.slane %v708_v54, 1  ;;  %v715_v26 = vrot.slane %v714_v59, 1  ;;  %v703_v15 = vrot.slane %v702_v13, 1  ;;  %v725_v0 = vrot.slane %v724_v53, 2 }
 0x190   : > { %v686_v31 = vmax.f32 %v684_v5, %v685_v11  ;;  %v721_v18 = vrot.slane %v720_v17, 1  ;;  %v692_v20 = vmax.f32 %v690_v58, %v691_v38  ;;  %v698_v21 = vmax.f32 %v696_v9, %v697_v12 }
 0x191   : > { %v710_v22 = vmax.f32 %v708_v54, %v709_v14  ;;  %v716_v19 = vmax.f32 %v714_v59, %v715_v26  ;;  %v704_v23 = vmax.f32 %v702_v13, %v703_v15  ;;  %v680_v42 = vmax.f32 %v1964_v52, %v679_v60 }
 0x192   : > { %v722_v34 = vmax.f32 %v720_v17, %v721_v18  ;;  %v737_v16 = vsub.f32 %v1980_v24, %v686_v31  ;;  %v738_v36 = vsub.f32 %v1982_v25, %v692_v20  ;;  %v739_v37 = vsub.f32 %v1984_v27, %v698_v21 }
 0x193   : > { %v741_v39 = vsub.f32 %v1986_v28, %v710_v22  ;;  %v742_v40 = vsub.f32 %v1988_v29, %v716_v19  ;;  %v2030_v41 = vpop.eup %1436  ;;  %v740_v43 = vsub.f32 %v1990_v30, %v704_v23  ;;  %v726_v48 = vmax.f32 %v724_v53, %v725_v0 }
 0x194   : > { %v743_v44 = vsub.f32 %v1992_v32, %v722_v34  ;;  %v761_v47 = vmul.f32 1.442695, %v737_v16  ;;  %v763_v49 = vmul.f32 1.442695, %v738_v36  ;;  %v765_v24 = vmul.f32 1.442695, %v739_v37 }
 0x195   : > { %v2037_v25 = vadd.f32 %v1921_v56, %v1962_v7  ;;  %v767_v27 = vmul.f32 1.442695, %v740_v43  ;;  %v769_v28 = vmul.f32 1.442695, %v741_v39  ;;  %v771_v29 = vmul.f32 1.442695, %v742_v40 }
 0x196   : > { %1438 = vpow2.f32 %v761_v47  ;;  %v773_v55 = vmul.f32 1.442695, %v743_v44  ;;  %v727_v61 = vrot.slane %v726_v48, 1  ;;  %v736_v3 = vsub.f32 %v1934_v2, %v680_v42 }
 0x197   : > { %1440 = vpow2.f32 %v763_v49  ;;  %v873_v52 = vmul.f32 %v1997_v35, %v2037_v25  ;;  %v874_v30 = vmul.f32 %v2011_v50, %v2037_v25  ;;  %v875_v32 = vmul.f32 %v2015_v62, %v2037_v25 }
 0x198   : > { %1442 = vpow2.f32 %v765_v24  ;;  %v876_v56 = vmul.f32 %v2017_v46, %v2037_v25  ;;  %v877_v57 = vmul.f32 %v2020_v8, %v2037_v25  ;;  %v878_v63 = vmul.f32 %v2022_v10, %v2037_v25 }
 0x199   : > { %1444 = vpow2.f32 %v767_v27  ;;  %v2053_v1 = vmul.f32 %v2030_v41, %v2037_v25  ;;  %v889_v4 = vrot.slane %v873_v52, 4  ;;  %v895_v5 = vrot.slane %v874_v30, 4 }
 0x19a   : > { %1446 = vpow2.f32 %v769_v28  ;;  %v901_v6 = vrot.slane %v875_v32, 4  ;;  %v728_v45 = vmax.f32 %v726_v48, %v727_v61  ;;  %v2058_v53 = vadd.f32 %v1912_v51, %v1962_v7 }
 0x19b   : > { %1448 = vpow2.f32 %v771_v29  ;;  %v759_v58 = vmul.f32 1.442695, %v736_v3  ;;  %v890_v9 = vadd.f32 %v889_v4, %v873_v52  ;;  %v896_v54 = vadd.f32 %v895_v5, %v874_v30 }
 0x19c   : > { %1450 = vpow2.f32 %v773_v55  ;;  %v902_v59 = vadd.f32 %v901_v6, %v875_v32  ;;  %v907_v60 = vrot.slane %v876_v56, 4  ;;  %v777_v2 = vrot.slane %v1997_v35, 4 }
 0x19d   : > { %v744_v17 = vsub.f32 %v1994_v33, %v728_v45  ;;  %1452 = vpow2.f32 %v759_v58  ;;  %v891_v7 = vrot.slane %v890_v9, 2  ;;  %v897_v14 = vrot.slane %v896_v54, 2 }
 0x19e   : > { %v903_v15 = vrot.slane %v902_v59, 2  ;;  %v908_v18 = vadd.f32 %v907_v60, %v876_v56  ;;  %v913_v0 = vrot.slane %v877_v57, 4  ;;  %v778_v22 = vadd.f32 %v1997_v35, %v777_v2 }
 0x19f   : > { %v783_v19 = vrot.slane %v2011_v50, 4  ;;  %v775_v34 = vmul.f32 1.442695, %v744_v17  ;;  %v892_v39 = vadd.f32 %v891_v7, %v890_v9  ;;  %v898_v40 = vadd.f32 %v897_v14, %v896_v54 }
 0x1a0   : > { %v2060_v11 = vpop.eup %1438  ;;  %v919_v42 = vrot.slane %v878_v63, 4  ;;  %v909_v44 = vrot.slane %v908_v18, 2  ;;  %v2094_v47 = vadd.f32 %v913_v0, %v877_v57  ;;  %v2096_v49 = vadd.f32 %v903_v15, %v902_v59 }
 0x1a1   : > { %v2063_v13 = vpop.eup %1440  ;;  %v881_v38 = vmul.f32 %v2060_v11, %v2058_v53  ;;  %v779_v24 = vrot.slane %v778_v22, 2  ;;  %v784_v27 = vadd.f32 %v2011_v50, %v783_v19  ;;  %1454 = vpow2.f32 %v775_v34 }
 0x1a2   : > { %v2068_v12 = vpop.eup %1442  ;;  %v882_v51 = vmul.f32 %v2063_v13, %v2058_v53  ;;  %v789_v29 = vrot.slane %v2015_v62, 4  ;;  %v893_v55 = vrot.slane %v892_v39, 1  ;;  %v899_v52 = vrot.slane %v898_v40, 1 }
 0x1a3   : > { %v2072_v26 = vpop.eup %1444  ;;  %v883_v31 = vmul.f32 %v2068_v12, %v2058_v53  ;;  %v937_v21 = vrot.slane %v881_v38, 4  ;;  %v2100_v30 = vadd.f32 %v919_v42, %v878_v63  ;;  %v925_v32 = vrot.slane %v2053_v1, 4 }
 0x1a4   : > { %v2076_v33 = vpop.eup %1446  ;;  %v884_v20 = vmul.f32 %v2072_v26, %v2058_v53  ;;  %v943_v35 = vrot.slane %v882_v51, 4  ;;  %v2103_v57 = vadd.f32 %v909_v44, %v908_v18  ;;  %v905_v50 = vrot.slane %v2096_v49, 1 }
 0x1a5   : > { %v2082_v23 = vpop.eup %1448  ;;  %v885_v16 = vmul.f32 %v2076_v33, %v2058_v53  ;;  %v938_v48 = vadd.f32 %v937_v21, %v881_v38  ;;  %v949_v28 = vrot.slane %v883_v31, 4  ;;  %v780_v6 = vadd.f32 %v779_v24, %v778_v22 }
 0x1a6   : > { %v2086_v36 = vpop.eup %1450  ;;  %v886_v37 = vmul.f32 %v2082_v23, %v2058_v53  ;;  %v944_v56 = vadd.f32 %v943_v35, %v882_v51  ;;  %v955_v61 = vrot.slane %v884_v20, 4  ;;  %v785_v45 = vrot.slane %v784_v27, 2 }
 0x1a7   : > { %v2092_v43 = vmul.f32 %v2086_v36, %v2058_v53  ;;  %v2106_v4 = vpop.eup %1452  ;;  %v939_v5 = vrot.slane %v938_v48, 2  ;;  %v950_v58 = vadd.f32 %v949_v28, %v883_v31  ;;  %v961_v9 = vrot.slane %v885_v16, 4 }
 0x1a8   : > { %v790_v63 = vadd.f32 %v2015_v62, %v789_v29  ;;  %v795_v54 = vrot.slane %v2017_v46, 4  ;;  %v2111_v59 = vadd.f32 %v893_v55, %v892_v39  ;;  %v2113_v60 = vadd.f32 %v899_v52, %v898_v40 }
 0x1a9   : > { %v801_v2 = vrot.slane %v2020_v8, 4  ;;  %v807_v17 = vrot.slane %v2022_v10, 4  ;;  %v945_v38 = vrot.slane %v944_v56, 2  ;;  %v956_v51 = vadd.f32 %v955_v61, %v884_v20 }
 0x1aa   : > { %v967_v7 = vrot.slane %v886_v37, 4  ;;  %v813_v14 = vrot.slane %v2030_v41, 4  ;;  %v940_v15 = vadd.f32 %v939_v5, %v938_v48  ;;  %v781_v31 = vrot.slane %v780_v6, 1 }
 0x1ab   : > { %v2118_v18 = vadd.f32 %v785_v45, %v784_v27  ;;  %v819_v62 = vrot.slane %v2106_v4, 4  ;;  %v951_v0 = vrot.slane %v950_v58, 2  ;;  %v2121_v21 = vadd.f32 %v961_v9, %v885_v16  ;;  %v1455_v42 = vpop.eup %1454 }
 0x1ac   : > { %v796_v22 = vadd.f32 %v2017_v46, %v795_v54  ;;  %v825_v19 = vrot.slane %v2060_v11, 4  ;;  %v802_v20 = vadd.f32 %v2020_v8, %v801_v2  ;;  %v808_v39 = vadd.f32 %v2022_v10, %v807_v17 }
 0x1ad   : > { %v831_v40 = vrot.slane %v2063_v13, 4  ;;  %v946_v35 = vadd.f32 %v945_v38, %v944_v56  ;;  %v957_v44 = vrot.slane %v956_v51, 2  ;;  %v2129_v48 = vadd.f32 %v967_v7, %v886_v37 }
 0x1ae   : > { %v814_v16 = vadd.f32 %v2030_v41, %v813_v14  ;;  %v941_v24 = vrot.slane %v940_v15, 1  ;;  %v2132_v27 = vadd.f32 %v781_v31, %v780_v6  ;;  %v820_v46 = vadd.f32 %v2106_v4, %v819_v62 }
 0x1af   : > { %v837_v28 = vrot.slane %v2068_v12, 4  ;;  %v2136_v29 = vadd.f32 %v951_v0, %v950_v58  ;;  %v791_v8 = vrot.slane %v790_v63, 2  ;;  %v797_v10 = vrot.slane %v796_v22, 2 }
 0x1b0   : > { %v826_v55 = vadd.f32 %v2060_v11, %v825_v19  ;;  %v803_v52 = vrot.slane %v802_v20, 2  ;;  %v809_v56 = vrot.slane %v808_v39, 2  ;;  %v832_v37 = vadd.f32 %v2063_v13, %v831_v40 }
 0x1b1   : > { %v838_v61 = vadd.f32 %v2068_v12, %v837_v28  ;;  %v947_v41 = vrot.slane %v946_v35, 1  ;;  %v787_v6 = vrot.slane %v2118_v18, 1  ;;  %v815_v45 = vrot.slane %v814_v16, 2 }
 0x1b2   : > { %v2143_v9 = vadd.f32 %v941_v24, %v940_v15  ;;  %v2145_v58 = vadd.f32 %v957_v44, %v956_v51  ;;  %v821_v54 = vrot.slane %v820_v46, 2  ;;  %v843_v2 = vrot.slane %v2072_v26, 4 }
 0x1b3   : > { %v792_v11 = vadd.f32 %v791_v8, %v790_v63  ;;  %v798_v17 = vadd.f32 %v797_v10, %v796_v22  ;;  %v827_v38 = vrot.slane %v826_v55, 2  ;;  %v849_v13 = vrot.slane %v2076_v33, 4 }
 0x1b4   : > { %v804_v7 = vadd.f32 %v803_v52, %v802_v20  ;;  %v810_v12 = vadd.f32 %v809_v56, %v808_v39  ;;  %v833_v14 = vrot.slane %v832_v37, 2  ;;  %v839_v31 = vrot.slane %v838_v61, 2 }
 0x1b5   : > { %v816_v62 = vadd.f32 %v815_v45, %v814_v16  ;;  %v844_v0 = vadd.f32 %v2072_v26, %v843_v2  ;;  %v855_v15 = vrot.slane %v2082_v23, 4  ;;  %v880_v51 = vmul.f32 %v2106_v4, %v2037_v25 }
 0x1b6   : > { %v822_v19 = vadd.f32 %v821_v54, %v820_v46  ;;  %v850_v40 = vadd.f32 %v2076_v33, %v849_v13  ;;  %v861_v63 = vrot.slane %v2086_v36, 4  ;;  %v888_v22 = vmul.f32 %v1455_v42, %v2058_v53 }
 0x1b7   : > { %v793_v39 = vrot.slane %v792_v11, 1  ;;  %v828_v44 = vadd.f32 %v827_v38, %v826_v55  ;;  %v867_v24 = vrot.slane %v1455_v42, 4  ;;  %v799_v16 = vrot.slane %v798_v17, 1 }
 0x1b8   : > { %v805_v28 = vrot.slane %v804_v7, 1  ;;  %v834_v26 = vadd.f32 %v833_v14, %v832_v37  ;;  %v840_v8 = vadd.f32 %v839_v31, %v838_v61  ;;  %v811_v10 = vrot.slane %v810_v12, 1 }
 0x1b9   : > { %v817_v52 = vrot.slane %v816_v62, 1  ;;  %v845_v56 = vrot.slane %v844_v0, 2  ;;  %v856_v25 = vadd.f32 %v2082_v23, %v855_v15  ;;  %v788_v33 = vadd.f32 %v787_v6, %v2118_v18 }
 0x1ba   : > { %v823_v4 = vrot.slane %v822_v19, 1  ;;  %v851_v46 = vrot.slane %v850_v40, 2  ;;  %v862_v53 = vadd.f32 %v2086_v36, %v861_v63  ;;  %v2160_v45 = vadd.f32 %v947_v41, %v946_v35 }
 0x1bb   : > { %v794_v54 = vadd.f32 %v793_v39, %v792_v11  ;;  %v829_v55 = vrot.slane %v828_v44, 1  ;;  %v868_v2 = vadd.f32 %v1455_v42, %v867_v24  ;;  %v800_v38 = vadd.f32 %v799_v16, %v798_v17 }
 0x1bc   : > { %v806_v13 = vadd.f32 %v805_v28, %v804_v7  ;;  %v835_v37 = vrot.slane %v834_v26, 1  ;;  %v841_v61 = vrot.slane %v840_v8, 1  ;;  %v812_v14 = vadd.f32 %v811_v10, %v810_v12 }
 0x1bd   : > { %v818_v31 = vadd.f32 %v817_v52, %v816_v62  ;;  %v846_v20 = vadd.f32 %v845_v56, %v844_v0  ;;  %v857_v5 = vrot.slane %v856_v25, 2  ;;  %v824_v23 = vadd.f32 %v823_v4, %v822_v19 }
 0x1be   : > { %v852_v15 = vadd.f32 %v851_v46, %v850_v40  ;;  %v863_v18 = vrot.slane %v862_v53, 2  ;;  %v931_v6 = vrot.slane %v880_v51, 4  ;;  %v830_v34 = vadd.f32 %v829_v55, %v828_v44 }
 0x1bf   : > { %v869_v3 = vrot.slane %v868_v2, 2  ;;  %v911_v36 = vrot.slane %v2103_v57, 1  ;;  %v926_v42 = vadd.f32 %v925_v32, %v2053_v1  ;;  %v836_v35 = vadd.f32 %v835_v37, %v834_v26 }
 0x1c0   : > { %v842_v41 = vadd.f32 %v841_v61, %v840_v8  ;;  %v2169_v11 = vadd.f32 %v905_v50, %v2096_v49  ;;  %v2309_v17 = vrot.slane %v2094_v47, 2  ;;  %v847_v12 = vrot.slane %v846_v20, 1 }
 0x1c1   : > { %v858_v62 = vadd.f32 %v857_v5, %v856_v25  ;;  %v921_v0 = vrot.slane %v2100_v30, 2  ;;  %v979_v19 = vrot.slane %v888_v22, 4  ;;  %v853_v40 = vrot.slane %v852_v15, 1 }
 0x1c2   : > { %v916_v7 = vadd.f32 %v2309_v17, %v2094_v47  ;;  %v864_v63 = vadd.f32 %v863_v18, %v862_v53  ;;  %v932_v39 = vadd.f32 %v931_v6, %v880_v51  ;;  %1456 = vrcp.f32 %v2132_v27 }
 0x1c3   : > { %v870_v1 = vadd.f32 %v869_v3, %v868_v2  ;;  %v912_v32 = vadd.f32 %v911_v36, %v2103_v57  ;;  %v927_v44 = vrot.slane %v926_v42, 2  ;;  %1458 = vrcp.f32 %v788_v33 }
 0x1c4   : > { %v917_v49 = vrot.slane %v916_v7, 1  ;;  %v2310_v50 = vrot.slane %v2092_v43, 4  ;;  %v980_v24 = vadd.f32 %v979_v19, %v888_v22  ;;  %1460 = vrcp.f32 %v794_v54 }
 0x1c5   : > { %v848_v5 = vadd.f32 %v847_v12, %v846_v20  ;;  %v859_v16 = vrot.slane %v858_v62, 1  ;;  %v922_v28 = vadd.f32 %v921_v0, %v2100_v30  ;;  %1462 = vrcp.f32 %v800_v38 }
 0x1c6   : > { %v974_v47 = vadd.f32 %v2310_v50, %v2092_v43  ;;  %v854_v51 = vadd.f32 %v853_v40, %v852_v15  ;;  %v865_v26 = vrot.slane %v864_v63, 1  ;;  %v933_v27 = vrot.slane %v932_v39, 2 }
 0x1c7   : > { %1464 = vrcp.f32 %v806_v13  ;;  %v871_v3 = vrot.slane %v870_v1, 1  ;;  %v928_v57 = vadd.f32 %v927_v44, %v926_v42  ;;  %v969_v8 = vrot.slane %v2129_v48, 2 }
 0x1c8   : > { %1466 = vrcp.f32 %v812_v14  ;;  %v918_v10 = vadd.f32 %v917_v49, %v916_v7  ;;  %v975_v52 = vrot.slane %v974_v47, 2  ;;  %v981_v56 = vrot.slane %v980_v24, 2 }
 0x1c9   : > { %1468 = vrcp.f32 %v818_v31  ;;  %v860_v43 = vadd.f32 %v859_v16, %v858_v62  ;;  %v923_v22 = vrot.slane %v922_v28, 1  ;;  %v2311_v20 = vrot.slane %v2121_v21, 2 }
 0x1ca   : > { %1470 = vrcp.f32 %v824_v23  ;;  %v866_v25 = vadd.f32 %v865_v26, %v864_v63  ;;  %v934_v33 = vadd.f32 %v933_v27, %v932_v39  ;;  %v959_v4 = vrot.slane %v2145_v58, 1 }
 0x1cb   : > { %v964_v30 = vadd.f32 %v2311_v20, %v2121_v21  ;;  %1472 = vrcp.f32 %v830_v34  ;;  %v872_v46 = vadd.f32 %v871_v3, %v870_v1  ;;  %v929_v53 = vrot.slane %v928_v57, 1 }
 0x1cc   : > { %v970_v54 = vadd.f32 %v969_v8, %v2129_v48  ;;  %1474 = vrcp.f32 %v836_v35  ;;  %v1457_v55 = vpop.eup %1456  ;;  %v2312_v2 = vrot.slane %v2136_v29, 1  ;;  %v976_v13 = vadd.f32 %v975_v52, %v974_v47 }
 0x1cd   : > { %v982_v37 = vadd.f32 %v981_v56, %v980_v24  ;;  %1476 = vrcp.f32 %v842_v41  ;;  %v1459_v21 = vpop.eup %1458  ;;  %v924_v61 = vadd.f32 %v923_v22, %v922_v28  ;;  %v965_v14 = vrot.slane %v964_v30, 1 }
 0x1ce   : > { %v954_v38 = vadd.f32 %v2312_v2, %v2136_v29  ;;  %1478 = vrcp.f32 %v848_v5  ;;  %v1001_v31 = vmul.f32 %v1457_v55, %v2111_v59  ;;  %v1461_v34 = vpop.eup %1460  ;;  %v935_v23 = vrot.slane %v934_v33, 1 }
 0x1cf   : > { %v960_v15 = vadd.f32 %v959_v4, %v2145_v58  ;;  %1480 = vrcp.f32 %v854_v51  ;;  %v1002_v48 = vmul.f32 %v1459_v21, %v2113_v60  ;;  %v1463_v18 = vpop.eup %1462  ;;  %v930_v6 = vadd.f32 %v929_v53, %v928_v57 }
 0x1d0   : > { %v971_v36 = vrot.slane %v970_v54, 1  ;;  %1482 = vrcp.f32 %v860_v43  ;;  %v1003_v29 = vmul.f32 %v1461_v34, %v2169_v11  ;;  %v977_v35 = vrot.slane %v976_v13, 1 }
 0x1d1   : > { %v1465_v42 = vpop.eup %1464  ;;  %v983_v41 = vrot.slane %v982_v37, 1  ;;  %1484 = vrcp.f32 %v866_v25  ;;  %v2194_v17 = vmul.f32 %v1463_v18, %v912_v32  ;;  %v966_v7 = vadd.f32 %v965_v14, %v964_v30 }
 0x1d2   : > { %v1467_v59 = vpop.eup %1466  ;;  %1486 = vrcp.f32 %v872_v46  ;;  %v1005_v12 = vmul.f32 %v1465_v42, %v918_v10  ;;  %v1033_v58 = vmul.f32 0.01, %v1001_v31  ;;  %v936_v0 = vadd.f32 %v935_v23, %v934_v33 }
 0x1d3   : > { %v1469_v62 = vpop.eup %1468  ;;  %v1006_v60 = vmul.f32 %v1467_v59, %v924_v61  ;;  %vm1017_vm0 = vcmp.ge.f32.partialorder %v1001_v31, 0.0  ;;  %v1034_v19 = vmul.f32 0.01, %v1002_v48  ;;  %v972_v63 = vadd.f32 %v971_v36, %v970_v54 }
 0x1d4   : > { %v1471_v40 = vpop.eup %1470  ;;  %v2196_v39 = vmul.f32 %v1469_v62, %v930_v6  ;;  %vm1018_vm1 = vcmp.ge.f32.partialorder %v1002_v48, 0.0  ;;  %v1035_v11 = vmul.f32 0.01, %v1003_v29  ;;  %v978_v32 = vadd.f32 %v977_v35, %v976_v13 }
 0x1d5   : > { %v1473_v1 = vpop.eup %1472  ;;  %v984_v44 = vadd.f32 %v983_v41, %v982_v37  ;;  %v2198_v49 = vmul.f32 %v1471_v40, %v936_v0  ;;  %vm1019_vm3 = vcmp.ge.f32.partialorder %v1003_v29, 0.0  ;;  %vm1020_vm5 = vcmp.ge.f32.partialorder %v2194_v17, 0.0 }
 0x1d6   : > { %v1475_v50 = vpop.eup %1474  ;;  %v1009_v47 = vmul.f32 %v1473_v1, %v2143_v9  ;;  %v1036_v24 = vmul.f32 0.01, %v2194_v17  ;;  %v1049_v5 = vsel %vm1017_vm0, %v1001_v31, %v1033_v58  ;;  %vm1021_vm7 = vcmp.ge.f32.partialorder %v1005_v12, 0.0 }
 0x1d7   : > { %v1477_v16 = vpop.eup %1476  ;;  %v1010_v28 = vmul.f32 %v1475_v50, %v2160_v45  ;;  %v1037_v51 = vmul.f32 0.01, %v1005_v12  ;;  %v1050_v26 = vsel %vm1018_vm1, %v1002_v48, %v1034_v19  ;;  %vm1022_vm9 = vcmp.ge.f32.partialorder %v1006_v60, 0.0 }
 0x1d8   : > { %v1479_v27 = vpop.eup %1478  ;;  %v1011_v3 = vmul.f32 %v1477_v16, %v954_v38  ;;  %v1038_v57 = vmul.f32 0.01, %v1006_v60  ;;  %v1051_v9 = vsel %vm1019_vm3, %v1003_v29, %v1035_v11  ;;  %vm1023_vm11 = vcmp.ge.f32.partialorder %v2196_v39, 0.0 }
 0x1d9   : > { %v1481_v8 = vpop.eup %1480  ;;  %v1012_v10 = vmul.f32 %v1479_v27, %v960_v15  ;;  %v1039_v52 = vmul.f32 0.01, %v2196_v39  ;;  %v1042_v56 = vmul.f32 0.01, %v1010_v28  ;;  %vm1026_vm13 = vcmp.ge.f32.partialorder %v1010_v28, 0.0 }
 0x1da   : > { %v1483_v45 = vpop.eup %1482  ;;  %v1013_v43 = vmul.f32 %v1481_v8, %v966_v7  ;;  %v1041_v22 = vmul.f32 0.01, %v1009_v47  ;;  %v1043_v20 = vmul.f32 0.01, %v1011_v3  ;;  %vm1025_vm15 = vcmp.ge.f32.partialorder %v1009_v47, 0.0 }
 0x1db   : > { %v1485_v30 = vpop.eup %1484  ;;  %v1014_v25 = vmul.f32 %v1483_v45, %v972_v63  ;;  %vm1027_vm0 = vcmp.ge.f32.partialorder %v1011_v3, 0.0  ;;  %v1044_v33 = vmul.f32 0.01, %v1012_v10  ;;  %vm1024_vm1 = vcmp.ge.f32.partialorder %v2198_v49, 0.0 }
 0x1dc   : > { %v1487_v4 = vpop.eup %1486  ;;  %v1015_v46 = vmul.f32 %v1485_v30, %v978_v32  ;;  %vm1028_vm3 = vcmp.ge.f32.partialorder %v1012_v10, 0.0  ;;  %v1052_v53 = vsel %vm1020_vm5, %v2194_v17, %v1036_v24  ;;  %v1040_v55 = vmul.f32 0.01, %v2198_v49 }
 0x1dd   : > { %v1016_v54 = vmul.f32 %v1487_v4, %v984_v44  ;;  %v1053_v2 = vsel %vm1021_vm7, %v1005_v12, %v1037_v51  ;;  %v1058_v38 = vsel %vm1026_vm13, %v1010_v28, %v1042_v56  ;;  %v1045_v13 = vmul.f32 0.01, %v1013_v43 }
 0x1de   : > { %v1054_v37 = vsel %vm1022_vm9, %v1006_v60, %v1038_v57  ;;  %v1057_v21 = vsel %vm1025_vm15, %v1009_v47, %v1041_v22  ;;  %v1059_v61 = vsel %vm1027_vm0, %v1011_v3, %v1043_v20  ;;  %vm1029_vm14 = vcmp.ge.f32.partialorder %v1013_v43, 0.0 }
 0x1df   : > { %v1046_v14 = vmul.f32 0.01, %v1014_v25  ;;  %v1060_v31 = vsel %vm1028_vm3, %v1012_v10, %v1044_v33  ;;  %v1082_v34 = vsel %vm1081_vm2, %v1050_v26, %v1049_v5  ;;  %vm1030_vm5 = vcmp.ge.f32.partialorder %v1014_v25, 0.0 }
 0x1e0   : > { %v1047_v23 = vmul.f32 0.01, %v1015_v46  ;;  %v1084_v15 = vsel %vm1083_vm4, %v1051_v9, %v1082_v34  ;;  %v1095_v48 = vsel %vm1081_vm2, %v1058_v38, %v1057_v21  ;;  %vm1031_vm7 = vcmp.ge.f32.partialorder %v1015_v46, 0.0 }
 0x1e1   : > { %v1048_v18 = vmul.f32 0.01, %v1016_v54  ;;  %v1086_v6 = vsel %vm1085_vm6, %v1052_v53, %v1084_v15  ;;  %v1096_v36 = vsel %vm1083_vm4, %v1059_v61, %v1095_v48  ;;  %vm1032_vm9 = vcmp.ge.f32.partialorder %v1016_v54, 0.0 }
 0x1e2   : > { %v1061_v29 = vsel %vm1029_vm14, %v1013_v43, %v1045_v13  ;;  %v1088_v42 = vsel %vm1087_vm8, %v1053_v2, %v1086_v6  ;;  %v1097_v35 = vsel %vm1085_vm6, %v1060_v31, %v1096_v36  ;;  %v1055_v41 = vsel %vm1023_vm11, %v2196_v39, %v1039_v52 }
 0x1e3   : > { %v1062_v17 = vsel %vm1030_vm5, %v1014_v25, %v1046_v14  ;;  %v1090_v59 = vsel %vm1089_vm10, %v1054_v37, %v1088_v42  ;;  %v1098_v7 = vsel %vm1087_vm8, %v1061_v29, %v1097_v35  ;;  %v1056_v12 = vsel %vm1024_vm1, %v2198_v49, %v1040_v55 }
 0x1e4   : > { %v1063_v58 = vsel %vm1031_vm7, %v1015_v46, %v1047_v23  ;;  %v1092_v62 = vsel %vm1091_vm12, %v1055_v41, %v1090_v59  ;;  %v1099_v0 = vsel %vm1089_vm10, %v1062_v17, %v1098_v7  ;;  %v1064_v60 = vsel %vm1032_vm9, %v1016_v54, %v1048_v18 }
 0x1e5   : > { %vm2313_vm2 = vcmask 1047559   ;;  %v1100_v40 = vsel %vm1091_vm12, %v1063_v58, %v1099_v0 }
 0x1e6   : > { %v1094_v19 = vsel %vm2313_vm2, %v1056_v12, %v1092_v62  ;;  %vm2314_vm4 = vmmov %vm2313_vm2 }
 0x1e7   : > { %v1101_v63 = vsel %vm2314_vm4, %v1064_v60, %v1100_v40  ;;  %1104 = vst [vmem:[%s215_s20] sm:$0xff] %v1094_v19 }
 0x1e8   : > { %1105 = vst [vmem:[%s215_s20 + $0x8] sm:$0xff] %v1101_v63 }
 0x1e9   : > { %1587 = shalt.err (!%p1584_p2)
}
 0x1ea   : > { %s1588_s25 = scalar_lea.hbm %s2243_s27, 256  ;;  %s1592_s24 = scalar_lea.hbm %s2295_s3, 512 }
 0x1eb   : > { %p1589_p13 = scmp.ne.s32.totalorder %s2243_s27, %s1588_s25  ;;  %p1593_p4 = scmp.lt.u32.totalorder %s2243_s27, %s2295_s3 }
 0x1ec   : > { %p1594_p5 = scmp.lt.u32.totalorder %s1592_s24, %s1588_s25  ;;  %p1596_p11 = scmp.lt.u32.totalorder %s1588_s25, %s2243_s27 }
 0x1ed   : > { %p1590_p6 = pnand %p1589_p13, %p2315_p0 }
 0x1ee   : > { %p1595_p8 = por %p1594_p5, %p1593_p4 }
 0x1ef   : > { %p1591_p10 = pneg %p1590_p6 }
 0x1f0   : > { %p1597_p1 = por %p1596_p11, %p1595_p8 }
 0x1f2   : > { %p1598_p3 = pnand %p1597_p1, %p1591_p10 }
 0x1f4   : > { %1601 = shalt.err (!%p1598_p3)
}
 0x1f5   : > { %s1656_s4 = smov 128   ;;  %s1657_s18 = smov 8  }
 0x1f6   : > { %1359 = dma.vmem_to_hbm [thread:$0]  (%p2315_p0), %s2245_s21, 256, %s2243_s27, %s1107_s28, %s1656_s4, %s1656_s4, %s1657_s18  }
 0x1f7 PF: > { %s1135_s20 = sand.u32 1, %s1632_s12   ;;  %p2316_p7 = scmp.ne.s32.totalorder %s2300_s19, 0 }
 0x1f8   : > { %p2317_p9 = scmp.ge.s32.totalorder %s1644_s15, 2  ;;  %s1136_s16 = scalar_lea.sflag [#allocation4], %s1135_s20 }
 0x1fa   : > { %p1373_p12 = pnand %p2317_p9, %p2316_p7 }
 0x1fc   : > { %1627 = dma.done.wait (!%p1373_p12), %s1136_s16, 256  }
 0x1fd   : > { %1629 = vsyncadd (!%p1373_p12), %s1136_s16, 4294967040  ;;  %p17_p2 = scmp.ge.s32.totalorder %s1789_s5, 4   ;;  %s2318_s12 = smov %s1636_s13 }
 0x1fe   : > { %s2319_s13 = smov %s1640_s14  ;;  %s2320_s14 = smov %s1805_s8 }
 0x1ff   : > { %s2321_s15 = smov %s1789_s5  ;;  %19 = sbr.rel (!%p17_p2) target bundleno = 6 (0x6), region = 85 }
 0x206   :  { %1141 = vsyncpa [#allocation3], 1 }
 0x207   :  { %1143 = vsyncpa [#allocation3 + $0x1], 1 }
 0x208   :  { %1144 = vsyncpa [#allocation6], 1 }
 0x209   :  { %1145 = vsyncpa [#allocation4], 1 }
 0x20a   :  { %1147 = vsyncpa [#allocation4 + $0x1], 1 }

</bundles_post_ra>
